<compile_context>
chip_gen: v7x
topology: tpu7x:2x2x1
jax: 0.10.0
libtpu: 0.0.40
codegen_flags: <defaults>
</compile_context>

<pallas_src>
import functools

import jax
import jax.numpy as jnp
from jax.experimental import pallas as pl
from jax.experimental.pallas import tpu as pltpu


def _shift(x, offset):
    """result[..., i] = x[..., (i + offset) % n] along the last (lane) axis."""
    n = x.shape[-1]
    s = (-offset) % n                 # pltpu.roll follows jnp.roll semantics
    if s == 0:
        return x
    return pltpu.roll(x, s, axis=x.ndim - 1)


def _depthwise3x3_circular(x, ktab, W, is_w0, is_wlast):
    """Circular-padded depthwise 3x3 cross-correlation on a flattened slab.

    x:        (C, H*W) float32, spatial flattened row-major (p = h * W + w).
    ktab:     (C, 9)   float32, tap index t = (dh + 1) * 3 + (dw + 1).
    is_w0:    (1, H*W) bool, lane is column 0 of its image row.
    is_wlast: (1, H*W) bool, lane is column W-1 of its image row.
    """
    # The three W-shifted variants (circular within each image row):
    # wrap column fixed with a lane select instead of concatenate copies.
    x_wm = jnp.where(is_w0, _shift(x, W - 1), _shift(x, -1))       # (h, w-1)
    x_wp = jnp.where(is_wlast, _shift(x, -(W - 1)), _shift(x, 1))  # (h, w+1)

    acc = jnp.zeros_like(x)
    for dw_i, xs in enumerate((x_wm, x, x_wp)):      # dw = -1, 0, +1
        for dh_i, dh in enumerate((-1, 0, 1)):       # dh = -1, 0, +1
            # Rolling the flat slab by dh*W is a circular H shift; the column
            # index of every lane is preserved, so the W-wrap fix above stays
            # valid after this roll.
            s = xs if dh == 0 else _shift(xs, dh * W)               # (h+dh, w+dw)
            t = dh_i * 3 + dw_i
            acc = acc + s * ktab[:, t:t + 1]          # per-channel tap weight
    return acc


def _double_conv_dw_kernel(W, mm_dtype,
                           alpha_ref, x_ref, dw1_ref, pw1_ref, dw2_ref,
                           pw2_ref, sc_ref, o_ref):
    x = x_ref[0].astype(jnp.float32)                  # (Cin, HW)
    alpha = alpha_ref[0]                              # PReLU slope (scalar, SMEM)
    HW = x.shape[-1]

    # Lane -> column-within-row masks (computed once, reused by both convs).
    col = jax.lax.broadcasted_iota(jnp.int32, (1, HW), 1) % W
    is_w0 = col == 0
    is_wlast = col == (W - 1)

    def pw(w2d, a):                                   # 1x1 conv == 2-D matmul
        return jnp.dot(w2d.astype(mm_dtype), a.astype(mm_dtype),
                       preferred_element_type=jnp.float32)

    # Shortcut first: x is last consumed by depthwise1 right below.
    acc = pw(sc_ref[...], x)                                        # (Cout, HW)

    # depthwise1 (residual folded into centre tap), pointwise1, PReLU.
    res1 = _depthwise3x3_circular(x, dw1_ref[...], W, is_w0, is_wlast)
    r1 = pw(pw1_ref[...], res1)                                     # (Cout, HW)
    r1 = jnp.where(r1 >= 0.0, r1, alpha * r1)

    # depthwise2 (residual folded), pointwise2, add shortcut accumulator.
    res2 = _depthwise3x3_circular(r1, dw2_ref[...], W, is_w0, is_wlast)
    acc = acc + pw(pw2_ref[...], res2)

    o_ref[0] = acc.astype(o_ref.dtype)


def double_conv_dw_pallas(x_nchw, params, *, matmul_dtype=jnp.float32):
    """x_nchw: (N, Cin, H, W) float32.  Returns (N, Cout, H, W).

    Set matmul_dtype=jnp.bfloat16 on v6e/v7x for faster pointwise matmuls
    (f32 accumulation is kept); the default keeps full f32 precision.
    """
    N, Cin, H, W = x_nchw.shape
    HW = H * W

    # Depthwise taps as (C, 9) tables; fold the "+x" / "+r1" residual adds
    # into the centre tap (dh=0, dw=0 -> index 4).
    dw1 = params["dw1"].reshape(Cin, 9).astype(jnp.float32).at[:, 4].add(1.0)
    dw2 = params["dw2"].reshape(-1, 9).astype(jnp.float32).at[:, 4].add(1.0)
    pw1 = params["pw1"][:, :, 0, 0]                                 # (Cout, Cin)
    pw2 = params["pw2"][:, :, 0, 0]                                 # (Cout, Cout)
    sc = params["sc"][:, :, 0, 0]                                   # (Cout, Cin)
    alpha = jnp.asarray(params["prelu"], jnp.float32).reshape((1,))
    Cout = pw1.shape[0]

    x_flat = x_nchw.reshape(N, Cin, HW)                             # free reshape

    kernel = functools.partial(_double_conv_dw_kernel, W, matmul_dtype)
    out_flat = pl.pallas_call(
        kernel,
        out_shape=jax.ShapeDtypeStruct((N, Cout, HW), x_nchw.dtype),
        grid_spec=pltpu.PrefetchScalarGridSpec(
            num_scalar_prefetch=0,
            grid=(N,),
            in_specs=[
                pl.BlockSpec(memory_space=pltpu.MemorySpace.SMEM),   # alpha
                pl.BlockSpec((1, Cin, HW), lambda n: (n, 0, 0)),     # x
                pl.BlockSpec((Cin, 9), lambda n: (0, 0)),            # dw1
                pl.BlockSpec((Cout, Cin), lambda n: (0, 0)),         # pw1
                pl.BlockSpec((Cout, 9), lambda n: (0, 0)),           # dw2
                pl.BlockSpec((Cout, Cout), lambda n: (0, 0)),        # pw2
                pl.BlockSpec((Cout, Cin), lambda n: (0, 0)),         # shortcut
            ],
            out_specs=pl.BlockSpec((1, Cout, HW), lambda n: (n, 0, 0)),
        ),
        compiler_params=pltpu.CompilerParams(
            dimension_semantics=("parallel",)),
    )(alpha, x_flat, dw1, pw1, dw2, pw2, sc)

    return out_flat.reshape(N, Cout, H, W)                          # free reshape


# ----------------------- pure-JAX reference (for checking) ------------------
def _ref_forward(x, params):
    def dw_conv(inp, w):
        xp = jnp.pad(inp, ((0, 0), (0, 0), (1, 1), (1, 1)), mode="wrap")
        return jax.lax.conv_general_dilated(
            xp, w, (1, 1), "VALID", feature_group_count=inp.shape[1],
            dimension_numbers=("NCHW", "OIHW", "NCHW"))

    def pw_conv(inp, w):
        return jax.lax.conv_general_dilated(
            inp, w, (1, 1), "VALID",
            dimension_numbers=("NCHW", "OIHW", "NCHW"))

    a = params["prelu"]
    res1 = dw_conv(x, params["dw1"]) + x
    r1 = pw_conv(res1, params["pw1"])
    r1 = jnp.where(r1 >= 0.0, r1, a * r1)
    res2 = dw_conv(r1, params["dw2"]) + r1
    out = pw_conv(res2, params["pw2"]) + pw_conv(x, params["sc"])
    return out


if __name__ == "__main__":
    N, Cin, Cout, H, W = 2, 4, 8, 16, 16

    key = jax.random.PRNGKey(0)
    kx, k1, k2, k3, k4, k5 = jax.random.split(key, 6)
    x = jax.random.normal(kx, (N, Cin, H, W), jnp.float32)

    params = {
        "dw1": jax.random.normal(k1, (Cin, 1, 3, 3), jnp.float32) * 0.2,
        "pw1": jax.random.normal(k2, (Cout, Cin, 1, 1), jnp.float32) * 0.2,
        "dw2": jax.random.normal(k3, (Cout, 1, 3, 3), jnp.float32) * 0.2,
        "pw2": jax.random.normal(k4, (Cout, Cout, 1, 1), jnp.float32) * 0.2,
        "sc": jax.random.normal(k5, (Cout, Cin, 1, 1), jnp.float32) * 0.2,
        "prelu": jnp.float32(0.25),   # PyTorch PReLU default init
    }

    out = jax.block_until_ready(double_conv_dw_pallas(x, params))
    ref = jax.block_until_ready(_ref_forward(x, params))

    assert out.shape == (N, Cout, H, W), out.shape
    assert jnp.allclose(out, ref, atol=1e-4, rtol=1e-4), (
        float(jnp.max(jnp.abs(out - ref))))
    print("KERNEL_OK")
</pallas_src>

<mosaic_0001>
module attributes {stable_mosaic.version = 11 : i64} {
  func.func @_double_conv_dw_kernel(%arg0: i32, %arg1: memref<1xf32, #tpu.memory_space<smem>>, %arg2: memref<1x4x256xf32, #tpu.memory_space<vmem>>, %arg3: memref<4x9xf32, #tpu.memory_space<vmem>>, %arg4: memref<8x4xf32, #tpu.memory_space<vmem>>, %arg5: memref<8x9xf32, #tpu.memory_space<vmem>>, %arg6: memref<8x8xf32, #tpu.memory_space<vmem>>, %arg7: memref<8x4xf32, #tpu.memory_space<vmem>>, %arg8: memref<1x8x256xf32, #tpu.memory_space<vmem>>) attributes {dimension_semantics = [#tpu.dimension_semantics<parallel>], iteration_bounds = array<i64: 2>, scalar_prefetch = 0 : i64, scratch_operands = 0 : i64, tpu.core_type = #tpu.core_type<tc>, window_params = [{transform_indices = @transform_0, window_bounds = array<i64: 1>}, {transform_indices = @transform_1, window_bounds = array<i64: 1, 4, 256>}, {pipeline_mode = #tpu.pipeline_mode<synchronous>, transform_indices = @transform_2, window_bounds = array<i64: 4, 9>}, {pipeline_mode = #tpu.pipeline_mode<synchronous>, transform_indices = @transform_3, window_bounds = array<i64: 8, 4>}, {pipeline_mode = #tpu.pipeline_mode<synchronous>, transform_indices = @transform_4, window_bounds = array<i64: 8, 9>}, {pipeline_mode = #tpu.pipeline_mode<synchronous>, transform_indices = @transform_5, window_bounds = array<i64: 8, 8>}, {pipeline_mode = #tpu.pipeline_mode<synchronous>, transform_indices = @transform_6, window_bounds = array<i64: 8, 4>}, {transform_indices = @transform_7, window_bounds = array<i64: 1, 8, 256>}]} {
    %c0 = arith.constant 0 : index
    %c0_0 = arith.constant 0 : index
    %c0_1 = arith.constant 0 : index
    %0 = vector.load %arg2[%c0, %c0_0, %c0_1] : memref<1x4x256xf32, #tpu.memory_space<vmem>>, vector<1x4x256xf32>
    %1 = vector.shape_cast %0 : vector<1x4x256xf32> to vector<4x256xf32>
    %c0_2 = arith.constant 0 : index
    %2 = memref.load %arg1[%c0_2] : memref<1xf32, #tpu.memory_space<smem>>
    %3 = tpu.iota {dimensions = array<i32: 1>} : vector<1x256xi32>
    %c16_i32 = arith.constant 16 : i32
    %c0_i32 = arith.constant 0 : i32
    %4 = arith.cmpi eq, %c16_i32, %c0_i32 : i32
    %c1_i32 = arith.constant 1 : i32
    %5 = arith.select %4, %c1_i32, %c16_i32 : i32
    %6 = vector.broadcast %5 : i32 to vector<1x256xi32>
    %7 = arith.remsi %3, %6 : vector<1x256xi32>
    %c0_i32_3 = arith.constant 0 : i32
    %8 = vector.broadcast %c0_i32_3 : i32 to vector<1x256xi32>
    %9 = arith.cmpi ne, %7, %8 : vector<1x256xi32>
    %c0_i32_4 = arith.constant 0 : i32
    %10 = vector.broadcast %c0_i32_4 : i32 to vector<1x256xi32>
    %11 = arith.cmpi slt, %7, %10 : vector<1x256xi32>
    %c0_i32_5 = arith.constant 0 : i32
    %12 = arith.cmpi slt, %5, %c0_i32_5 : i32
    %13 = vector.broadcast %12 : i1 to vector<1x256xi1>
    %14 = vector.broadcast %13 : vector<1x256xi1> to vector<1x256xi1>
    %15 = arith.xori %11, %14 : vector<1x256xi1>
    %16 = arith.andi %15, %9 : vector<1x256xi1>
    %17 = vector.broadcast %5 : i32 to vector<1x256xi32>
    %18 = arith.addi %7, %17 : vector<1x256xi32>
    %19 = arith.select %16, %18, %7 : vector<1x256xi1>, vector<1x256xi32>
    %c0_i32_6 = arith.constant 0 : i32
    %20 = vector.broadcast %c0_i32_6 : i32 to vector<1x256xi32>
    %21 = arith.cmpi eq, %19, %20 : vector<1x256xi32>
    %c15_i32 = arith.constant 15 : i32
    %22 = vector.broadcast %c15_i32 : i32 to vector<1x256xi32>
    %23 = arith.cmpi eq, %19, %22 : vector<1x256xi32>
    %c0_7 = arith.constant 0 : index
    %c0_8 = arith.constant 0 : index
    %24 = vector.load %arg7[%c0_7, %c0_8] : memref<8x4xf32, #tpu.memory_space<vmem>>, vector<8x4xf32>
    %cst = arith.constant dense<0.000000e+00> : vector<8x256xf32>
    %25 = tpu.matmul %24, %1, %cst {dimension_numbers = #tpu.dot_dimension_numbers<[1], [0], [0], [1], [0, 0, 1, 1], [], []>} : vector<8x4xf32>, vector<4x256xf32>, vector<8x256xf32> -> vector<8x256xf32>
    %c0_9 = arith.constant 0 : index
    %c0_10 = arith.constant 0 : index
    %26 = vector.load %arg3[%c0_9, %c0_10] : memref<4x9xf32, #tpu.memory_space<vmem>>, vector<4x9xf32>
    %c241_i32 = arith.constant 241 : i32
    %27 = tpu.dynamic_rotate %1 by %c241_i32 dim 1 : vector<4x256xf32>, i32 -> vector<4x256xf32>
    %c1_i32_11 = arith.constant 1 : i32
    %28 = tpu.dynamic_rotate %1 by %c1_i32_11 dim 1 : vector<4x256xf32>, i32 -> vector<4x256xf32>
    %29 = vector.shape_cast %21 : vector<1x256xi1> to vector<1x256xi1>
    %30 = vector.broadcast %29 : vector<1x256xi1> to vector<4x256xi1>
    %31 = arith.select %30, %27, %28 : vector<4x256xi1>, vector<4x256xf32>
    %c15_i32_12 = arith.constant 15 : i32
    %32 = tpu.dynamic_rotate %1 by %c15_i32_12 dim 1 : vector<4x256xf32>, i32 -> vector<4x256xf32>
    %c255_i32 = arith.constant 255 : i32
    %33 = tpu.dynamic_rotate %1 by %c255_i32 dim 1 : vector<4x256xf32>, i32 -> vector<4x256xf32>
    %34 = vector.shape_cast %23 : vector<1x256xi1> to vector<1x256xi1>
    %35 = vector.broadcast %34 : vector<1x256xi1> to vector<4x256xi1>
    %36 = arith.select %35, %32, %33 : vector<4x256xi1>, vector<4x256xf32>
    %cst_13 = arith.constant 0.000000e+00 : f32
    %37 = vector.broadcast %cst_13 : f32 to vector<4x256xf32>
    %c16_i32_14 = arith.constant 16 : i32
    %38 = tpu.dynamic_rotate %31 by %c16_i32_14 dim 1 : vector<4x256xf32>, i32 -> vector<4x256xf32>
    %39 = vector.extract_strided_slice %26 {offsets = [0, 0], sizes = [4, 1], strides = [1, 1]} : vector<4x9xf32> to vector<4x1xf32>
    %40 = vector.broadcast %39 : vector<4x1xf32> to vector<4x256xf32>
    %41 = arith.mulf %38, %40 : vector<4x256xf32>
    %42 = arith.addf %37, %41 : vector<4x256xf32>
    %43 = vector.extract_strided_slice %26 {offsets = [0, 3], sizes = [4, 1], strides = [1, 1]} : vector<4x9xf32> to vector<4x1xf32>
    %44 = vector.broadcast %43 : vector<4x1xf32> to vector<4x256xf32>
    %45 = arith.mulf %31, %44 : vector<4x256xf32>
    %46 = arith.addf %42, %45 : vector<4x256xf32>
    %c240_i32 = arith.constant 240 : i32
    %47 = tpu.dynamic_rotate %31 by %c240_i32 dim 1 : vector<4x256xf32>, i32 -> vector<4x256xf32>
    %48 = vector.extract_strided_slice %26 {offsets = [0, 6], sizes = [4, 1], strides = [1, 1]} : vector<4x9xf32> to vector<4x1xf32>
    %49 = vector.broadcast %48 : vector<4x1xf32> to vector<4x256xf32>
    %50 = arith.mulf %47, %49 : vector<4x256xf32>
    %51 = arith.addf %46, %50 : vector<4x256xf32>
    %c16_i32_15 = arith.constant 16 : i32
    %52 = tpu.dynamic_rotate %1 by %c16_i32_15 dim 1 : vector<4x256xf32>, i32 -> vector<4x256xf32>
    %53 = vector.extract_strided_slice %26 {offsets = [0, 1], sizes = [4, 1], strides = [1, 1]} : vector<4x9xf32> to vector<4x1xf32>
    %54 = vector.broadcast %53 : vector<4x1xf32> to vector<4x256xf32>
    %55 = arith.mulf %52, %54 : vector<4x256xf32>
    %56 = arith.addf %51, %55 : vector<4x256xf32>
    %57 = vector.extract_strided_slice %26 {offsets = [0, 4], sizes = [4, 1], strides = [1, 1]} : vector<4x9xf32> to vector<4x1xf32>
    %58 = vector.broadcast %57 : vector<4x1xf32> to vector<4x256xf32>
    %59 = arith.mulf %1, %58 : vector<4x256xf32>
    %60 = arith.addf %56, %59 : vector<4x256xf32>
    %c240_i32_16 = arith.constant 240 : i32
    %61 = tpu.dynamic_rotate %1 by %c240_i32_16 dim 1 : vector<4x256xf32>, i32 -> vector<4x256xf32>
    %62 = vector.extract_strided_slice %26 {offsets = [0, 7], sizes = [4, 1], strides = [1, 1]} : vector<4x9xf32> to vector<4x1xf32>
    %63 = vector.broadcast %62 : vector<4x1xf32> to vector<4x256xf32>
    %64 = arith.mulf %61, %63 : vector<4x256xf32>
    %65 = arith.addf %60, %64 : vector<4x256xf32>
    %c16_i32_17 = arith.constant 16 : i32
    %66 = tpu.dynamic_rotate %36 by %c16_i32_17 dim 1 : vector<4x256xf32>, i32 -> vector<4x256xf32>
    %67 = vector.extract_strided_slice %26 {offsets = [0, 2], sizes = [4, 1], strides = [1, 1]} : vector<4x9xf32> to vector<4x1xf32>
    %68 = vector.broadcast %67 : vector<4x1xf32> to vector<4x256xf32>
    %69 = arith.mulf %66, %68 : vector<4x256xf32>
    %70 = arith.addf %65, %69 : vector<4x256xf32>
    %71 = vector.extract_strided_slice %26 {offsets = [0, 5], sizes = [4, 1], strides = [1, 1]} : vector<4x9xf32> to vector<4x1xf32>
    %72 = vector.broadcast %71 : vector<4x1xf32> to vector<4x256xf32>
    %73 = arith.mulf %36, %72 : vector<4x256xf32>
    %74 = arith.addf %70, %73 : vector<4x256xf32>
    %c240_i32_18 = arith.constant 240 : i32
    %75 = tpu.dynamic_rotate %36 by %c240_i32_18 dim 1 : vector<4x256xf32>, i32 -> vector<4x256xf32>
    %76 = vector.extract_strided_slice %26 {offsets = [0, 8], sizes = [4, 1], strides = [1, 1]} : vector<4x9xf32> to vector<4x1xf32>
    %77 = vector.broadcast %76 : vector<4x1xf32> to vector<4x256xf32>
    %78 = arith.mulf %75, %77 : vector<4x256xf32>
    %79 = arith.addf %74, %78 : vector<4x256xf32>
    %c0_19 = arith.constant 0 : index
    %c0_20 = arith.constant 0 : index
    %80 = vector.load %arg4[%c0_19, %c0_20] : memref<8x4xf32, #tpu.memory_space<vmem>>, vector<8x4xf32>
    %cst_21 = arith.constant dense<0.000000e+00> : vector<8x256xf32>
    %81 = tpu.matmul %80, %79, %cst_21 {dimension_numbers = #tpu.dot_dimension_numbers<[1], [0], [0], [1], [0, 0, 1, 1], [], []>} : vector<8x4xf32>, vector<4x256xf32>, vector<8x256xf32> -> vector<8x256xf32>
    %cst_22 = arith.constant 0.000000e+00 : f32
    %82 = vector.broadcast %cst_22 : f32 to vector<8x256xf32>
    %83 = arith.cmpf oge, %81, %82 : vector<8x256xf32>
    %84 = vector.broadcast %2 : f32 to vector<8x256xf32>
    %85 = arith.mulf %84, %81 : vector<8x256xf32>
    %86 = arith.select %83, %81, %85 : vector<8x256xi1>, vector<8x256xf32>
    %c0_23 = arith.constant 0 : index
    %c0_24 = arith.constant 0 : index
    %87 = vector.load %arg5[%c0_23, %c0_24] : memref<8x9xf32, #tpu.memory_space<vmem>>, vector<8x9xf32>
    %c241_i32_25 = arith.constant 241 : i32
    %88 = tpu.dynamic_rotate %86 by %c241_i32_25 dim 1 : vector<8x256xf32>, i32 -> vector<8x256xf32>
    %c1_i32_26 = arith.constant 1 : i32
    %89 = tpu.dynamic_rotate %86 by %c1_i32_26 dim 1 : vector<8x256xf32>, i32 -> vector<8x256xf32>
    %90 = vector.shape_cast %21 : vector<1x256xi1> to vector<1x256xi1>
    %91 = vector.broadcast %90 : vector<1x256xi1> to vector<8x256xi1>
    %92 = arith.select %91, %88, %89 : vector<8x256xi1>, vector<8x256xf32>
    %c15_i32_27 = arith.constant 15 : i32
    %93 = tpu.dynamic_rotate %86 by %c15_i32_27 dim 1 : vector<8x256xf32>, i32 -> vector<8x256xf32>
    %c255_i32_28 = arith.constant 255 : i32
    %94 = tpu.dynamic_rotate %86 by %c255_i32_28 dim 1 : vector<8x256xf32>, i32 -> vector<8x256xf32>
    %95 = vector.shape_cast %23 : vector<1x256xi1> to vector<1x256xi1>
    %96 = vector.broadcast %95 : vector<1x256xi1> to vector<8x256xi1>
    %97 = arith.select %96, %93, %94 : vector<8x256xi1>, vector<8x256xf32>
    %cst_29 = arith.constant 0.000000e+00 : f32
    %98 = vector.broadcast %cst_29 : f32 to vector<8x256xf32>
    %c16_i32_30 = arith.constant 16 : i32
    %99 = tpu.dynamic_rotate %92 by %c16_i32_30 dim 1 : vector<8x256xf32>, i32 -> vector<8x256xf32>
    %100 = vector.extract_strided_slice %87 {offsets = [0, 0], sizes = [8, 1], strides = [1, 1]} : vector<8x9xf32> to vector<8x1xf32>
    %101 = vector.broadcast %100 : vector<8x1xf32> to vector<8x256xf32>
    %102 = arith.mulf %99, %101 : vector<8x256xf32>
    %103 = arith.addf %98, %102 : vector<8x256xf32>
    %104 = vector.extract_strided_slice %87 {offsets = [0, 3], sizes = [8, 1], strides = [1, 1]} : vector<8x9xf32> to vector<8x1xf32>
    %105 = vector.broadcast %104 : vector<8x1xf32> to vector<8x256xf32>
    %106 = arith.mulf %92, %105 : vector<8x256xf32>
    %107 = arith.addf %103, %106 : vector<8x256xf32>
    %c240_i32_31 = arith.constant 240 : i32
    %108 = tpu.dynamic_rotate %92 by %c240_i32_31 dim 1 : vector<8x256xf32>, i32 -> vector<8x256xf32>
    %109 = vector.extract_strided_slice %87 {offsets = [0, 6], sizes = [8, 1], strides = [1, 1]} : vector<8x9xf32> to vector<8x1xf32>
    %110 = vector.broadcast %109 : vector<8x1xf32> to vector<8x256xf32>
    %111 = arith.mulf %108, %110 : vector<8x256xf32>
    %112 = arith.addf %107, %111 : vector<8x256xf32>
    %c16_i32_32 = arith.constant 16 : i32
    %113 = tpu.dynamic_rotate %86 by %c16_i32_32 dim 1 : vector<8x256xf32>, i32 -> vector<8x256xf32>
    %114 = vector.extract_strided_slice %87 {offsets = [0, 1], sizes = [8, 1], strides = [1, 1]} : vector<8x9xf32> to vector<8x1xf32>
    %115 = vector.broadcast %114 : vector<8x1xf32> to vector<8x256xf32>
    %116 = arith.mulf %113, %115 : vector<8x256xf32>
    %117 = arith.addf %112, %116 : vector<8x256xf32>
    %118 = vector.extract_strided_slice %87 {offsets = [0, 4], sizes = [8, 1], strides = [1, 1]} : vector<8x9xf32> to vector<8x1xf32>
    %119 = vector.broadcast %118 : vector<8x1xf32> to vector<8x256xf32>
    %120 = arith.mulf %86, %119 : vector<8x256xf32>
    %121 = arith.addf %117, %120 : vector<8x256xf32>
    %c240_i32_33 = arith.constant 240 : i32
    %122 = tpu.dynamic_rotate %86 by %c240_i32_33 dim 1 : vector<8x256xf32>, i32 -> vector<8x256xf32>
    %123 = vector.extract_strided_slice %87 {offsets = [0, 7], sizes = [8, 1], strides = [1, 1]} : vector<8x9xf32> to vector<8x1xf32>
    %124 = vector.broadcast %123 : vector<8x1xf32> to vector<8x256xf32>
    %125 = arith.mulf %122, %124 : vector<8x256xf32>
    %126 = arith.addf %121, %125 : vector<8x256xf32>
    %c16_i32_34 = arith.constant 16 : i32
    %127 = tpu.dynamic_rotate %97 by %c16_i32_34 dim 1 : vector<8x256xf32>, i32 -> vector<8x256xf32>
    %128 = vector.extract_strided_slice %87 {offsets = [0, 2], sizes = [8, 1], strides = [1, 1]} : vector<8x9xf32> to vector<8x1xf32>
    %129 = vector.broadcast %128 : vector<8x1xf32> to vector<8x256xf32>
    %130 = arith.mulf %127, %129 : vector<8x256xf32>
    %131 = arith.addf %126, %130 : vector<8x256xf32>
    %132 = vector.extract_strided_slice %87 {offsets = [0, 5], sizes = [8, 1], strides = [1, 1]} : vector<8x9xf32> to vector<8x1xf32>
    %133 = vector.broadcast %132 : vector<8x1xf32> to vector<8x256xf32>
    %134 = arith.mulf %97, %133 : vector<8x256xf32>
    %135 = arith.addf %131, %134 : vector<8x256xf32>
    %c240_i32_35 = arith.constant 240 : i32
    %136 = tpu.dynamic_rotate %97 by %c240_i32_35 dim 1 : vector<8x256xf32>, i32 -> vector<8x256xf32>
    %137 = vector.extract_strided_slice %87 {offsets = [0, 8], sizes = [8, 1], strides = [1, 1]} : vector<8x9xf32> to vector<8x1xf32>
    %138 = vector.broadcast %137 : vector<8x1xf32> to vector<8x256xf32>
    %139 = arith.mulf %136, %138 : vector<8x256xf32>
    %140 = arith.addf %135, %139 : vector<8x256xf32>
    %c0_36 = arith.constant 0 : index
    %c0_37 = arith.constant 0 : index
    %141 = vector.load %arg6[%c0_36, %c0_37] : memref<8x8xf32, #tpu.memory_space<vmem>>, vector<8x8xf32>
    %cst_38 = arith.constant dense<0.000000e+00> : vector<8x256xf32>
    %142 = tpu.matmul %141, %140, %cst_38 {dimension_numbers = #tpu.dot_dimension_numbers<[1], [0], [0], [1], [0, 0, 1, 1], [], []>} : vector<8x8xf32>, vector<8x256xf32>, vector<8x256xf32> -> vector<8x256xf32>
    %143 = arith.addf %25, %142 : vector<8x256xf32>
    %c0_39 = arith.constant 0 : index
    %c0_40 = arith.constant 0 : index
    %c0_41 = arith.constant 0 : index
    %144 = vector.load %arg8[%c0_39, %c0_40, %c0_41] : memref<1x8x256xf32, #tpu.memory_space<vmem>>, vector<1x8x256xf32>
    %145 = vector.shape_cast %144 : vector<1x8x256xf32> to vector<8x256xf32>
    %146 = vector.shape_cast %143 : vector<8x256xf32> to vector<1x8x256xf32>
    tpu.vector_store %arg8[%c0_39, %c0_40, %c0_41], %146 {strides = array<i32>} : memref<1x8x256xf32, #tpu.memory_space<vmem>>, vector<1x8x256xf32>,
    return
  }
  func.func @transform_0(%arg0: i32) -> i32 {
    %c0_i32 = arith.constant 0 : i32
    %c0_i32_0 = arith.constant 0 : i32
    return %c0_i32 : i32
  }
  func.func @transform_1(%arg0: i32) -> (i32, i32, i32) {
    %c0_i32 = arith.constant 0 : i32
    %c0_i32_0 = arith.constant 0 : i32
    %c0_i32_1 = arith.constant 0 : i32
    return %arg0, %c0_i32, %c0_i32_0 : i32, i32, i32
  }
  func.func @transform_2(%arg0: i32) -> (i32, i32) {
    %c0_i32 = arith.constant 0 : i32
    %c0_i32_0 = arith.constant 0 : i32
    %c0_i32_1 = arith.constant 0 : i32
    return %c0_i32, %c0_i32_0 : i32, i32
  }
  func.func @transform_3(%arg0: i32) -> (i32, i32) {
    %c0_i32 = arith.constant 0 : i32
    %c0_i32_0 = arith.constant 0 : i32
    %c0_i32_1 = arith.constant 0 : i32
    return %c0_i32, %c0_i32_0 : i32, i32
  }
  func.func @transform_4(%arg0: i32) -> (i32, i32) {
    %c0_i32 = arith.constant 0 : i32
    %c0_i32_0 = arith.constant 0 : i32
    %c0_i32_1 = arith.constant 0 : i32
    return %c0_i32, %c0_i32_0 : i32, i32
  }
  func.func @transform_5(%arg0: i32) -> (i32, i32) {
    %c0_i32 = arith.constant 0 : i32
    %c0_i32_0 = arith.constant 0 : i32
    %c0_i32_1 = arith.constant 0 : i32
    return %c0_i32, %c0_i32_0 : i32, i32
  }
  func.func @transform_6(%arg0: i32) -> (i32, i32) {
    %c0_i32 = arith.constant 0 : i32
    %c0_i32_0 = arith.constant 0 : i32
    %c0_i32_1 = arith.constant 0 : i32
    return %c0_i32, %c0_i32_0 : i32, i32
  }
  func.func @transform_7(%arg0: i32) -> (i32, i32, i32) {
    %c0_i32 = arith.constant 0 : i32
    %c0_i32_0 = arith.constant 0 : i32
    %c0_i32_1 = arith.constant 0 : i32
    return %arg0, %c0_i32, %c0_i32_0 : i32, i32, i32
  }
}

</mosaic_0001>

<bundles_post_ra>
// kernel: tpu_custom_call.1
= control target key start
LH: loop header
LB: loop body
LE: loop exit
PB: predicated region body
PF: predicated region fallthrough
CT: control target
= control target key end

     0   :  { %s1628_s0 = inlined_call_operand.<no memory space> [shape: f32[1], index: 0, kind: input, shape index: {}]   ;;  %s1629_s1 = inlined_call_operand.vmem [shape: f32[2,4,256], index: 1, kind: input, shape index: {}]   ;;  %s1630_s2 = inlined_call_operand.hbm [shape: f32[4,9], index: 2, kind: input, shape index: {}]   ;;  %s1631_s3 = inlined_call_operand.vmem [shape: f32[8,4], index: 3, kind: input, shape index: {}]   ;;  %s1632_s4 = inlined_call_operand.vmem [shape: f32[8,9], index: 4, kind: input, shape index: {}]   ;;  %s1633_s5 = inlined_call_operand.vmem [shape: f32[8,8], index: 5, kind: input, shape index: {}]   ;;  %s1634_s6 = inlined_call_operand.vmem [shape: f32[8,4], index: 6, kind: input, shape index: {}]   ;;  %s1635_s7 = inlined_call_operand.hbm [shape: f32[2,8,256], index: 7, kind: output, shape index: {}]  }
   0x1   :  { %12 = sst [smem:[#allocation2]] %s1628_s0 }
   0x2   :  { %13 = vsyncpa [#allocation4], 0 }
   0x3   :  { %14 = vsyncpa [#allocation5], 0 }
   0x4   :  { %16 = vsyncpa [#allocation5 + $0x1], 0  ;;  %s1228_s26 = smov 0   ;;  %s1230_s27 = smov 0  }
   0x5   :  { %s1232_s28 = smov 0   ;;  %s1234_s29 = smov 0  }
   0x6 LB: > { %s1249_s0 = sadd.s32 4294967295, %s1164_s29   ;;  %s959_s30 = sadd.s32 4294967294, %s1164_s29   ;;  %s1164_s29 = sphi %s1234_s29, %s1659_s29   ;;  %s1160_s28 = sphi %s1232_s28, %s1658_s28   ;;  %s1156_s27 = sphi %s1230_s27, %s1657_s27   ;;  %s1152_s26 = sphi %s1228_s26, %s1656_s26  }
   0x7   : > { %s1253_s8 = sadd.s32 1, %s1164_s29   ;;  %s181_s9 = sadd.s32 1, %s1160_s28 }
   0x8   : > { %s178_s10 = ssub.s32 %s1164_s29, %s1253_s8  ;;  %p191_p0 = scmp.ne.s32.totalorder %s1160_s28, %s1156_s27 }
   0x9   : > { %p179_p1 = scmp.eq.s32.totalorder %s178_s10, 0  ;;  %p192_p2 = scmp.eq.s32.totalorder %s1249_s0, 1 }
   0xa   : > { %p197_p3 = scmp.ne.s32.totalorder %s1156_s27, %s1152_s26  ;;  %p198_p4 = scmp.eq.s32.totalorder %s959_s30, 1 }
   0xb   : > { %s1264_s11 = scalar_select %p179_p1, %s1160_s28, %s181_s9  }
   0xc   : > { %p1266_p5 = por %p192_p2, %p191_p0  ;;  %p1270_p6 = por %p198_p4, %p197_p3 }
   0xd   : > { %p960_p7 = scmp.ge.s32.totalorder %s1164_s29, 1  ;;  %p205_p8 = scmp.lt.s32.totalorder %s1164_s29, 3 }
   0xe   : > { %s1639_s12 = scalar_select %p1266_p5, 1, 0 }
   0xf   : > { %s1640_s13 = scalar_select %p1270_p6, 1, 0 }
  0x10   : > { %p1636_p9 = scmp.eq.s32.totalorder %s1249_s0, 0  ;;  %p1277_p10 = pnand %p960_p7, %p205_p8 }
  0x11   : > { %s1166_s15 = smov [#allocation3]   ;;  %s1070_s20 = scalar_lea.hbm %s1630_s2, 64 }
  0x12   : > { %s1641_s14 = scalar_select %p1277_p10, 1, 0 }
  0x13   : > { %s221_s16 = sshll.u32 %s1166_s15, 4  ;;  %p990_p11 = pneg %p1277_p10  ;;  %s222_s16 = int_to_ptr.vmem [resolvable:$true] %s221_s16 }
  0x14   : > { %p1071_p13 = scmp.ne.s32.totalorder %s1630_s2, %s1070_s20  ;;  %p1077_p3 = scmp.lt.u32.totalorder %s1070_s20, %s1630_s2 }
  0x15   : > { %p1285_p12 = pnand %p1636_p9, %p990_p11 }
  0x17   : > { %p1072_p0 = pneg %p1285_p12 }
  0x19   : > { %p1073_p1 = pnand %p1072_p0, %p1071_p13 }
  0x1b   : > { %p1074_p2 = pneg %p1073_p1 }
  0x1d   : > { %p1079_p4 = pnand %p1077_p3, %p1074_p2 }
  0x1f   : > { %1082 = shalt.err (!%p1079_p4)
}
  0x20   : > { %s1083_s25 = scalar_lea.vmem %s222_s16, 64  ;;  %p1091_p9 = scmp.lt.s32.totalorder %s222_s16, %s222_s16 }
  0x21   : > { %p1084_p7 = scmp.ne.s32.totalorder %s222_s16, %s1083_s25  ;;  %p1092_p6 = scmp.lt.s32.totalorder %s1083_s25, %s1083_s25 }
  0x23   : > { %p1086_p8 = pnand %p1084_p7, %p1072_p0  ;;  %p1093_p5 = por %p1092_p6, %p1091_p9 }
  0x25   : > { %p1087_p11 = pneg %p1086_p8 }
  0x27   : > { %p1094_p10 = pnand %p1093_p5, %p1087_p11 }
  0x29   : > { %1097 = shalt.err (!%p1094_p10)
}
  0x2a   : > { %993 = dma.hbm_to_vmem [thread:$0]  (!%p1285_p12), %s1630_s2, 64, %s222_s16, [#allocation4]  }
  0x2b   : > { %p1643_p13 = scmp.ne.s32.totalorder %s1641_s14, 0 }
  0x2c   : > { %p1644_p1 = scmp.eq.s32.totalorder (!%p1643_p13), %s1249_s0, 0 }
  0x2d   : > { %254 = sbr.rel (%p1643_p13) target bundleno = 1063 (0x427), region = 48 }
  0x34   : > { %1143 = dma.done.wait (%p1644_p1), [#allocation4], 64   ;;  %p1645_p0 = pmov %p1644_p1 }
  0x35   : > { %p286_p6 = scmp.lt.s32.totalorder %s1249_s0, 1  ;;  %v1167_v0 = vmov 3   ;;  %v1168_v1 = vmov 4   ;;  %s1169_s18 = smov 1   ;;  %v1340_v4 = vld [vmem:[#allocation3] sm:$0xf]  ;;  %v293_v12 = vlaneseq }
  0x36   : > { %1145 = vsyncadd (%p1645_p0), [#allocation4], 4294967232  ;;  %1051 = vset.pattern.permute.xlu1 %v1167_v0  ;;  %1053 = vset.pattern.permute.xlu0 %v1168_v1  ;;  %s1170_s19 = smov 113   ;;  %s1171_s20 = smov 15   ;;  %v1173_v5 = vmov 6   ;;  %v1175_v6 = vmov 2  }
  0x37   : > { %s287_s10 = scalar_select %p286_p6, %s1249_s0, 1  ;;  %v1176_v7 = vmov 1   ;;  %v1177_v8 = vmov 0   ;;  %v1178_v9 = vmov 7   ;;  %v1179_v10 = vmov 5  }
  0x38   : > { %s1172_s21 = smov 127   ;;  %s1174_s22 = smov 16   ;;  %v1181_v11 = vmov 8   ;;  %v1362_v13 = vand.u32 127, %v293_v12  ;;  %v1182_v41 = vmov 0.0   ;;  %v429_v54 = vshrl.u32 %v293_v12, 7 }
  0x39   : > { %s980_s15 = sshll.u32 %s287_s10, 3  ;;  %s1180_s23 = smov 112   ;;  %565 = vmatprep.mubr.f32.mxu0 %v1182_v41  ;;  %786 = vmatprep.mubr.f32.mxu1 %v1182_v41  ;;  %v1183_v49 = vmov 839922192   ;;  %vm494_vm10 = vcmask 1043456   ;;  %vm490_vm11 = vcmask 31744  }
  0x3a   : > { %s290_s17 = scalar_lea.vmem %s1629_s1, %s980_s15  ;;  %v295_v14 = vadd.s32 128, %v1362_v13  ;;  %v300_v16 = vand.u32 15, %v1362_v13  ;;  %vm340_vm0 = vcmp.lt.s32.totalorder %v1362_v13, 1  ;;  %vm333_vm1 = vcmp.lt.s32.totalorder %v1362_v13, 113  ;;  %s292_s30 = sld [smem:[#allocation2]] }
  0x3b   : > { %v1318_v2 = vld [vmem:[%s290_s17] sm:$0xff]  ;;  %vm353_vm4 = vcmp.lt.s32.totalorder %v1362_v13, 15  ;;  %vm360_vm5 = vcmp.lt.s32.totalorder %v1362_v13, 127  ;;  %v426_v50 = vunpack.c.l.s4 %v1183_v49  ;;  %vm373_vm8 = vcmp.lt.s32.totalorder %v1362_v13, 16  ;;  %p1654_p9 = scmp.ne.s32.totalorder %s1639_s12, 0 }
  0x3c   : > { %336 = vrot.lane.b32.xlu1 %v1318_v2, %s1169_s18  ;;  %329 = vrot.lane.b32.xlu0 %v1318_v2, %s1170_s19  ;;  %v1326_v3 = vcombine.high %v1318_v2, %v1318_v2  ;;  %v307_v15 = vand.u32 15, %v295_v14  ;;  %vm1372_vm3 = vcmp.eq.s32.totalorder %v300_v16, 0  ;;  %vm1398_vm7 = vcmp.eq.s32.totalorder %v300_v16, 15 }
  0x3d   : > { %v427_v53 = vunpack.c.0.s8 %v426_v50  ;;  %vm397_vm9 = vcmp.lt.s32.totalorder %v1362_v13, 112  ;;  %vm718_vm14 = vcmask 64512   ;;  %v324_v13 = vld [vmem:[%s1634_s6] sm:$0xff] }
  0x3e   : > { %vm1368_vm2 = vcmp.eq.s32.totalorder %v307_v15, 0  ;;  %vm1394_vm6 = vcmp.eq.s32.totalorder %v307_v15, 15 }
  0x3f   : > { %v430_v57 = vsub.s32 %v427_v53, %v429_v54 }
  0x40   : > { %338 = vrot.lane.b32.xlu1 %v1326_v3, %s1169_s18  ;;  %331 = vrot.lane.b32.xlu0 %v1326_v3, %s1170_s19 }
  0x44   : > { %351 = vrot.lane.b32.xlu1 %v1326_v3, %s1171_s20  ;;  %349 = vrot.lane.b32.xlu0 %v1318_v2, %s1171_s20 }
  0x48   : > { %358 = vrot.lane.b32.xlu1 %v1326_v3, %s1172_s21  ;;  %356 = vrot.lane.b32.xlu0 %v1318_v2, %s1172_s21 }
  0x4c   : > { %386 = vperm.xlu1 %1051, %v1340_v4   ;;  %423 = vperm.xlu0 %1053, %v1340_v4  }
  0x50   : > { %1052 = vset.pattern.permute.xlu1 %v1173_v5  ;;  %408 = vrot.lane.b32.xlu0 %v1318_v2, %s1174_s22 }
  0x51   : > { %401 = vperm.xlu1 %1052, %v1340_v4   ;;  %1056 = vset.pattern.permute.xlu0 %v1175_v6 }
  0x54   : > { %460 = vperm.xlu0 %1056, %v1340_v4  }
  0x55   : > { %1054 = vset.pattern.permute.xlu1 %v1176_v7 }
  0x56   : > { %415 = vperm.xlu1 %1054, %v1340_v4  }
  0x58   : > { %1057 = vset.pattern.permute.xlu0 %v1177_v8 }
  0x59   : > { %378 = vperm.xlu0 %1057, %v1340_v4  }
  0x5a   : > { %1055 = vset.pattern.permute.xlu1 %v1178_v9 }
  0x5b   : > { %446 = vperm.xlu1 %1055, %v1340_v4  }
  0x5f   : > { %410 = vrot.lane.b32.xlu1 %v1326_v3, %s1174_s22 }
  0x60   : > { %1058 = vset.pattern.permute.xlu1 %v1179_v10 }
  0x63   : > { %468 = vperm.xlu1 %1058, %v1340_v4  }
  0x67   : > { %439 = vrot.lane.b32.xlu1 %v1318_v2, %s1180_s23 }
  0x68   : > { %1059 = vset.pattern.permute.xlu1 %v1181_v11 }
  0xae   : > { %v337_v17 = vpop.permute.xlu1 %336  ;;  %v330_v18 = vpop.permute.xlu0 %329 }
  0xb2   : > { %v339_v21 = vpop.permute.xlu1 %338  ;;  %v332_v22 = vpop.permute.xlu0 %331 }
  0xb3   : > { %v341_v23 = vsel %vm340_vm0, %v337_v17, %v339_v21  ;;  %v342_v24 = vsel %vm340_vm0, %v339_v21, %v337_v17  ;;  %v334_v25 = vsel %vm333_vm1, %v330_v18, %v332_v22  ;;  %v335_v26 = vsel %vm333_vm1, %v332_v22, %v330_v18 }
  0xb4   : > { %v348_v27 = vsel %vm1368_vm2, %v335_v26, %v341_v23  ;;  %v347_v28 = vsel %vm1372_vm3, %v334_v25, %v342_v24 }
  0xb5   : > { %371 = vrot.lane.b32.xlu0 %v348_v27, %s1174_s22  ;;  %369 = vrot.lane.b32.xlu1 %v347_v28, %s1174_s22 }
  0xb6   : > { %v352_v29 = vpop.permute.xlu1 %351  ;;  %v350_v30 = vpop.permute.xlu0 %349 }
  0xb7   : > { %v354_v35 = vsel %vm353_vm4, %v350_v30, %v352_v29  ;;  %v355_v36 = vsel %vm353_vm4, %v352_v29, %v350_v30 }
  0xb9   : > { %395 = vrot.lane.b32.xlu0 %v348_v27, %s1180_s23  ;;  %393 = vrot.lane.b32.xlu1 %v347_v28, %s1180_s23 }
  0xba   : > { %v359_v31 = vpop.permute.xlu1 %358  ;;  %v357_v32 = vpop.permute.xlu0 %356 }
  0xbb   : > { %v361_v37 = vsel %vm360_vm5, %v357_v32, %v359_v31  ;;  %v362_v38 = vsel %vm360_vm5, %v359_v31, %v357_v32 }
  0xbc   : > { %v1415_v39 = vsel %vm1394_vm6, %v354_v35, %v362_v38  ;;  %v1419_v40 = vsel %vm1398_vm7, %v355_v36, %v361_v37 }
  0xbd   : > { %441 = vrot.lane.b32.xlu0 %v1326_v3, %s1180_s23  ;;  %482 = vperm.xlu1 %1059, %v1340_v4  }
  0xc1   : > { %455 = vrot.lane.b32.xlu1 %v1415_v39, %s1174_s22  ;;  %453 = vrot.lane.b32.xlu0 %v1419_v40, %s1174_s22 }
  0xc2   : > { %1060 = vset.pattern.permute.xlu1 %v1167_v0 }
  0xc5   : > { %477 = vrot.lane.b32.xlu1 %v1415_v39, %s1180_s23  ;;  %475 = vrot.lane.b32.xlu0 %v1419_v40, %s1180_s23 }
  0xcb   : > { %v387_v42 = vpop.permute.xlu1 %386  ;;  %v424_v45 = vpop.permute.xlu0 %423 }
  0xcc   : > { %v431_v58 = vrot.slane %v424_v45, %v430_v57  ;;  %v389_v4 = vmul.f32 %v387_v42, %v347_v28  ;;  %v390_v8 = vmul.f32 %v387_v42, %v348_v27 }
  0xce   : > { %v433_v12 = vmul.f32 %v431_v58, %v1318_v2 }
  0xcf   : > { %v409_v47 = vpop.permute.xlu0 %408 }
  0xd0   : > { %v402_v43 = vpop.permute.xlu1 %401  ;;  %v435_v30 = vcombine.high %v433_v12, %v433_v12 }
  0xd3   : > { %v461_v51 = vpop.permute.xlu0 %460 }
  0xd5   : > { %v416_v44 = vpop.permute.xlu1 %415 }
  0xd8   : > { %v379_v56 = vpop.permute.xlu0 %378 }
  0xda   : > { %v447_v46 = vpop.permute.xlu1 %446 }
  0xde   : > { %v411_v48 = vpop.permute.xlu1 %410 }
  0xdf   : > { %v412_v16 = vsel %vm373_vm8, %v409_v47, %v411_v48  ;;  %v413_v17 = vsel %vm373_vm8, %v411_v48, %v409_v47 }
  0xe0   : > { %v418_v26 = vmul.f32 %v416_v44, %v413_v17  ;;  %v419_v27 = vmul.f32 %v416_v44, %v412_v16 }
  0xe2   : > { %v469_v52 = vpop.permute.xlu1 %468 }
  0xe3   : > { %v471_v58 = vmul.f32 %v469_v52, %v1419_v40  ;;  %v574_v40 = vstv %s292_s30 }
  0xe6   : > { %v440_v55 = vpop.permute.xlu1 %439 }
 0x127   : > { %v370_v59 = vpop.permute.xlu1 %369  ;;  %v372_v60 = vpop.permute.xlu0 %371 }
 0x128   : > { %v374_v61 = vsel %vm373_vm8, %v370_v59, %v372_v60  ;;  %v375_v62 = vsel %vm373_vm8, %v372_v60, %v370_v59  ;;  %v472_v59 = vmul.f32 %v469_v52, %v1415_v39  ;;  %v489_v39 = vld [vmem:[%s1631_s3] sm:$0xff] }
 0x129   : > { %v381_v63 = vmul.f32 %v379_v56, %v375_v62  ;;  %v382_v0 = vmul.f32 %v379_v56, %v374_v61 }
 0x12b   : > { %v394_v14 = vpop.permute.xlu1 %393  ;;  %v396_v15 = vpop.permute.xlu0 %395  ;;  %v391_v22 = vadd.f32 %v389_v4, %v381_v63  ;;  %v392_v23 = vadd.f32 %v390_v8, %v382_v0 }
 0x12c   : > { %v398_v18 = vsel %vm397_vm9, %v394_v14, %v396_v15  ;;  %v399_v21 = vsel %vm397_vm9, %v396_v15, %v394_v14 }
 0x12d   : > { %v404_v24 = vmul.f32 %v402_v43, %v398_v18  ;;  %v405_v25 = vmul.f32 %v402_v43, %v399_v21 }
 0x12f   : > { %v406_v28 = vadd.f32 %v404_v24, %v391_v22  ;;  %v407_v29 = vadd.f32 %v405_v25, %v392_v23  ;;  %v442_v37 = vpop.permute.xlu0 %441  ;;  %v579_v22 = vld [vmem:[%s1632_s4] sm:$0xff] }
 0x130   : > { %v443_v42 = vsel %vm397_vm9, %v440_v55, %v442_v37  ;;  %v444_v45 = vsel %vm397_vm9, %v442_v37, %v440_v55 }
 0x131   : > { %v420_v31 = vadd.f32 %v418_v26, %v406_v28  ;;  %v421_v32 = vadd.f32 %v419_v27, %v407_v29  ;;  %v449_v48 = vmul.f32 %v447_v46, %v443_v42  ;;  %v450_v43 = vmul.f32 %v447_v46, %v444_v45 }
 0x133   : > { %v437_v35 = vadd.f32 %v433_v12, %v420_v31  ;;  %v438_v36 = vadd.f32 %v435_v30, %v421_v32  ;;  %v454_v47 = vpop.permute.xlu0 %453 }
 0x135   : > { %v451_v53 = vadd.f32 %v449_v48, %v437_v35  ;;  %v452_v54 = vadd.f32 %v450_v43, %v438_v36 }
 0x137   : > { %v476_v60 = vpop.permute.xlu0 %475 }
 0x13c   : > { %v483_v38 = vpop.permute.xlu1 %482 }
 0x140   : > { %v456_v49 = vpop.permute.xlu1 %455 }
 0x141   : > { %v457_v44 = vsel %vm373_vm8, %v454_v47, %v456_v49  ;;  %v458_v50 = vsel %vm373_vm8, %v456_v49, %v454_v47 }
 0x142   : > { %v463_v56 = vmul.f32 %v461_v51, %v458_v50  ;;  %v464_v57 = vmul.f32 %v461_v51, %v457_v44 }
 0x144   : > { %v465_v55 = vadd.f32 %v463_v56, %v451_v53  ;;  %v466_v61 = vadd.f32 %v464_v57, %v452_v54  ;;  %v478_v62 = vpop.permute.xlu1 %477 }
 0x145   : > { %v479_v46 = vsel %vm397_vm9, %v476_v60, %v478_v62  ;;  %v480_v63 = vsel %vm397_vm9, %v478_v62, %v476_v60 }
 0x146   : > { %v485_v0 = vmul.f32 %v483_v38, %v479_v46  ;;  %v486_v4 = vmul.f32 %v483_v38, %v480_v63  ;;  %v474_v8 = vadd.f32 %v472_v59, %v466_v61  ;;  %v473_v12 = vadd.f32 %v471_v58, %v465_v55 }
 0x148   : > { %v488_v51 = vadd.f32 %v486_v4, %v474_v8  ;;  %v487_v14 = vadd.f32 %v485_v0, %v473_v12 }
 0x14a   : > { %968 = vmatprep.subr.msk.mxu0 %vm494_vm10, %v488_v51 }
 0x14b   : > { %969 = vmatpush1.msk.msra.mxu0 %vm494_vm10, %v487_v14 }
 0x14c   : > { %970 = vmatmul.mubr.msk.f32.vlgmr.msra.gmra.mrb[0].mxu0 %vm490_vm11, %v489_v39 }
 0x21f   : > { %v567_v52 = vpop.f32.mrb[0].mxu0 }
 0x220   : > { %vm572_vm12 = vcmp.ge.f32.partialorder %v567_v52, 0.0  ;;  %v569_v15 = vpop.f32.mrb[1].mxu0  ;;  %v575_v16 = vmul.f32 %v574_v40, %v567_v52 }
 0x221   : > { %vm573_vm13 = vcmp.ge.f32.partialorder %v569_v15, 0.0  ;;  %v576_v17 = vmul.f32 %v574_v40, %v569_v15 }
 0x222   : > { %v1467_v18 = vsel %vm572_vm12, %v567_v52, %v575_v16 }
 0x223   : > { %v1469_v21 = vsel %vm573_vm13, %v569_v15, %v576_v17  ;;  %580 = vrot.lane.b32.xlu0 %v1467_v18, %s1170_s19 }
 0x224   : > { %582 = vrot.lane.b32.xlu1 %v1469_v21, %s1170_s19 }
 0x227   : > { %586 = vrot.lane.b32.xlu0 %v1467_v18, %s1169_s18 }
 0x228   : > { %588 = vrot.lane.b32.xlu1 %v1469_v21, %s1169_s18  ;;  %s283_s18 = sand.u32 1, %s1156_s27  }
 0x229   : > { %s965_s19 = sshll.u32 %s283_s18, 4  ;;  %s874_s30 = scalar_lea.sflag [#allocation5], %s283_s18 }
 0x22b   : > { %594 = vrot.lane.b32.xlu0 %v1467_v18, %s1171_s20 }
 0x22c   : > { %596 = vrot.lane.b32.xlu1 %v1469_v21, %s1171_s20  ;;  %s285_s20 = scalar_lea.vmem [#allocation6], %s965_s19 }
 0x22f   : > { %600 = vrot.lane.b32.xlu0 %v1467_v18, %s1172_s21 }
 0x230   : > { %602 = vrot.lane.b32.xlu1 %v1469_v21, %s1172_s21  ;;  %s888_s21 = sshll.u32 %s285_s20, 4  ;;  %s1583_s21 = int_to_ptr.vmem [resolvable:$true] %s888_s21 }
 0x231   : > { %s1098_s9 = scalar_lea.vmem %s1583_s21, 256 }
 0x232   : > { %p1099_p5 = scmp.ne.s32.totalorder %s1583_s21, %s1098_s9 }
 0x233   : > { %616 = vperm.xlu0 %1057, %v579_v22  }
 0x234   : > { %624 = vperm.xlu1 %1060, %v579_v22   ;;  %p1100_p10 = pnand %p1099_p5, %p1654_p9 }
 0x236   : > { %p1101_p12 = pneg %p1100_p10 }
 0x237   : > { %1062 = vset.pattern.permute.xlu0 %v1176_v7 }
 0x238   : > { %652 = vperm.xlu0 %1062, %v579_v22   ;;  %1061 = vset.pattern.permute.xlu1 %v1173_v5 }
 0x239   : > { %638 = vperm.xlu1 %1061, %v579_v22  }
 0x23c   : > { %1063 = vset.pattern.permute.xlu0 %v1168_v1 }
 0x23d   : > { %660 = vperm.xlu0 %1063, %v579_v22   ;;  %645 = vrot.lane.b32.xlu1 %v1467_v18, %s1174_s22 }
 0x23e   : > { %1066 = vset.pattern.permute.xlu1 %v1179_v10 }
 0x241   : > { %1064 = vset.pattern.permute.xlu0 %v1178_v9  ;;  %696 = vperm.xlu1 %1066, %v579_v22  }
 0x242   : > { %674 = vperm.xlu0 %1064, %v579_v22  }
 0x245   : > { %667 = vrot.lane.b32.xlu1 %v1467_v18, %s1180_s23 }
 0x246   : > { %1065 = vset.pattern.permute.xlu0 %v1175_v6  ;;  %1067 = vset.pattern.permute.xlu1 %v1181_v11 }
 0x247   : > { %688 = vperm.xlu0 %1065, %v579_v22  }
 0x249   : > { %647 = vrot.lane.b32.xlu1 %v1469_v21, %s1174_s22 }
 0x24b   : > { %669 = vrot.lane.b32.xlu0 %v1469_v21, %s1180_s23 }
 0x24c   : > { %1068 = vset.pattern.permute.xlu0 %v1181_v11 }
 0x295   : > { %v581_v1 = vpop.permute.xlu0 %580 }
 0x296   : > { %v583_v5 = vpop.permute.xlu1 %582 }
 0x297   : > { %v584_v10 = vsel %vm333_vm1, %v581_v1, %v583_v5  ;;  %v585_v26 = vsel %vm333_vm1, %v583_v5, %v581_v1 }
 0x299   : > { %v587_v7 = vpop.permute.xlu0 %586 }
 0x29a   : > { %v589_v9 = vpop.permute.xlu1 %588 }
 0x29b   : > { %v591_v6 = vsel %vm340_vm0, %v589_v9, %v587_v7  ;;  %v590_v24 = vsel %vm340_vm0, %v587_v7, %v589_v9 }
 0x29c   : > { %v592_v23 = vsel %vm1372_vm3, %v584_v10, %v591_v6  ;;  %v593_v27 = vsel %vm1368_vm2, %v585_v26, %v590_v24 }
 0x29d   : > { %v595_v25 = vpop.permute.xlu0 %594  ;;  %608 = vrot.lane.b32.xlu1 %v592_v23, %s1174_s22 }
 0x29e   : > { %v597_v11 = vpop.permute.xlu1 %596 }
 0x29f   : > { %v599_v20 = vsel %vm353_vm4, %v597_v11, %v595_v25  ;;  %v598_v32 = vsel %vm353_vm4, %v595_v25, %v597_v11 }
 0x2a1   : > { %v601_v28 = vpop.permute.xlu0 %600  ;;  %610 = vrot.lane.b32.xlu1 %v593_v27, %s1174_s22 }
 0x2a2   : > { %v603_v29 = vpop.permute.xlu1 %602 }
 0x2a3   : > { %v604_v30 = vsel %vm360_vm5, %v601_v28, %v603_v29  ;;  %v605_v19 = vsel %vm360_vm5, %v603_v29, %v601_v28 }
 0x2a4   : > { %v1526_v31 = vsel %vm1398_vm7, %v599_v20, %v604_v30  ;;  %v607_v34 = vsel %vm1394_vm6, %v598_v32, %v605_v19 }
 0x2a5   : > { %631 = vrot.lane.b32.xlu1 %v592_v23, %s1180_s23  ;;  %681 = vrot.lane.b32.xlu0 %v1526_v31, %s1174_s22 }
 0x2a9   : > { %633 = vrot.lane.b32.xlu1 %v593_v27, %s1180_s23  ;;  %703 = vrot.lane.b32.xlu0 %v1526_v31, %s1180_s23 }
 0x2ad   : > { %710 = vperm.xlu1 %1067, %v579_v22  }
 0x2b1   : > { %683 = vrot.lane.b32.xlu1 %v607_v34, %s1174_s22  ;;  %s981_s22 = sshll.u32 %s1249_s0, 8  ;;  %s1184_s0 = smov [#allocation6]  }
 0x2b2   : > { %v617_v48 = vpop.permute.xlu0 %616  ;;  %s1588_s25 = scalar_lea.hbm %s1635_s7, %s981_s22  ;;  %s1102_s10 = sshll.u32 %s1184_s0, 4  ;;  %s1103_s10 = int_to_ptr.vmem [resolvable:$false] %s1102_s10 }
 0x2b3   : > { %v625_v35 = vpop.permute.xlu1 %624  ;;  %s1104_s15 = scalar_lea.vmem %s1103_s10, 512  ;;  %p1105_p2 = scmp.lt.s32.totalorder %s1583_s21, %s1103_s10 }
 0x2b4   : > { %v627_v55 = vmul.f32 %v625_v35, %v592_v23  ;;  %v628_v61 = vmul.f32 %v625_v35, %v593_v27  ;;  %p1106_p3 = scmp.lt.s32.totalorder %s1104_s15, %s1098_s9 }
 0x2b5   : > { %705 = vrot.lane.b32.xlu1 %v607_v34, %s1180_s23 }
 0x2b6   : > { %p1107_p4 = por %p1106_p3, %p1105_p2 }
 0x2b7   : > { %v653_v49 = vpop.permute.xlu0 %652 }
 0x2b8   : > { %v639_v36 = vpop.permute.xlu1 %638  ;;  %p1108_p7 = pnand %p1107_p4, %p1101_p12 }
 0x2bc   : > { %v646_v37 = vpop.permute.xlu1 %645  ;;  %v661_v50 = vpop.permute.xlu0 %660 }
 0x2bd   : > { %v663_v17 = vmul.f32 %v661_v50, %v1467_v18  ;;  %v664_v22 = vmul.f32 %v661_v50, %v1469_v21 }
 0x2c0   : > { %v697_v38 = vpop.permute.xlu1 %696 }
 0x2c1   : > { %v675_v56 = vpop.permute.xlu0 %674  ;;  %v699_v29 = vmul.f32 %v697_v38, %v1526_v31  ;;  %v700_v20 = vmul.f32 %v697_v38, %v607_v34  ;;  %v717_v31 = vld [vmem:[%s1633_s5] sm:$0xff] }
 0x2c4   : > { %v668_v42 = vpop.permute.xlu1 %667 }
 0x2c6   : > { %v689_v63 = vpop.permute.xlu0 %688 }
 0x2c8   : > { %v648_v45 = vpop.permute.xlu1 %647 }
 0x2c9   : > { %v649_v8 = vsel %vm373_vm8, %v646_v37, %v648_v45  ;;  %v650_v12 = vsel %vm373_vm8, %v648_v45, %v646_v37 }
 0x2ca   : > { %v655_v39 = vmul.f32 %v653_v49, %v650_v12  ;;  %v656_v40 = vmul.f32 %v653_v49, %v649_v8  ;;  %v670_v52 = vpop.permute.xlu0 %669 }
 0x2cb   : > { %v671_v5 = vsel %vm397_vm9, %v668_v42, %v670_v52  ;;  %v672_v7 = vsel %vm397_vm9, %v670_v52, %v668_v42 }
 0x2cc   : > { %v677_v23 = vmul.f32 %v675_v56, %v671_v5  ;;  %v678_v24 = vmul.f32 %v675_v56, %v672_v7 }
 0x30f   : > { %v609_v47 = vpop.permute.xlu1 %608 }
 0x313   : > { %v611_v43 = vpop.permute.xlu1 %610 }
 0x314   : > { %v612_v33 = vsel %vm373_vm8, %v609_v47, %v611_v43  ;;  %v613_v54 = vsel %vm373_vm8, %v611_v43, %v609_v47 }
 0x315   : > { %v619_v59 = vmul.f32 %v617_v48, %v613_v54  ;;  %v620_v60 = vmul.f32 %v617_v48, %v612_v33 }
 0x317   : > { %v632_v44 = vpop.permute.xlu1 %631  ;;  %v629_v0 = vadd.f32 %v627_v55, %v619_v59  ;;  %v630_v4 = vadd.f32 %v628_v61, %v620_v60  ;;  %v682_v9 = vpop.permute.xlu0 %681 }
 0x31b   : > { %v634_v53 = vpop.permute.xlu1 %633  ;;  %v704_v30 = vpop.permute.xlu0 %703 }
 0x31c   : > { %v635_v57 = vsel %vm397_vm9, %v632_v44, %v634_v53  ;;  %v636_v58 = vsel %vm397_vm9, %v634_v53, %v632_v44 }
 0x31d   : > { %v641_v62 = vmul.f32 %v639_v36, %v635_v57  ;;  %v642_v46 = vmul.f32 %v639_v36, %v636_v58 }
 0x31f   : > { %v643_v51 = vadd.f32 %v641_v62, %v629_v0  ;;  %v644_v14 = vadd.f32 %v642_v46, %v630_v4 }
 0x321   : > { %v657_v15 = vadd.f32 %v655_v39, %v643_v51  ;;  %v658_v16 = vadd.f32 %v656_v40, %v644_v14 }
 0x323   : > { %v665_v10 = vadd.f32 %v663_v17, %v657_v15  ;;  %v666_v6 = vadd.f32 %v664_v22, %v658_v16 }
 0x325   : > { %v679_v21 = vadd.f32 %v677_v23, %v665_v10  ;;  %v680_v28 = vadd.f32 %v678_v24, %v666_v6 }
 0x32c   : > { %v711_v1 = vpop.permute.xlu1 %710 }
 0x330   : > { %v684_v25 = vpop.permute.xlu1 %683 }
 0x331   : > { %v685_v11 = vsel %vm373_vm8, %v682_v9, %v684_v25  ;;  %v686_v18 = vsel %vm373_vm8, %v684_v25, %v682_v9 }
 0x332   : > { %v691_v26 = vmul.f32 %v689_v63, %v686_v18  ;;  %v692_v27 = vmul.f32 %v689_v63, %v685_v11 }
 0x334   : > { %v693_v19 = vadd.f32 %v691_v26, %v679_v21  ;;  %v706_v32 = vpop.permute.xlu1 %705  ;;  %v694_v35 = vadd.f32 %v692_v27, %v680_v28 }
 0x335   : > { %v707_v36 = vsel %vm397_vm9, %v704_v30, %v706_v32  ;;  %v708_v37 = vsel %vm397_vm9, %v706_v32, %v704_v30 }
 0x336   : > { %v713_v42 = vmul.f32 %v711_v1, %v707_v36  ;;  %v702_v45 = vadd.f32 %v700_v20, %v694_v35  ;;  %v714_v47 = vmul.f32 %v711_v1, %v708_v37  ;;  %v701_v48 = vadd.f32 %v699_v29, %v693_v19 }
 0x338   : > { %v716_v43 = vadd.f32 %v714_v47, %v702_v45  ;;  %v715_v49 = vadd.f32 %v713_v42, %v701_v48 }
 0x33a   : > { %722 = vmatprep.subr.mxu1 %v716_v43 }
 0x33b   : > { %723 = vmatpush1.msra.mxu1 %v715_v49 }
 0x33c   : > { %971 = vmatmul.mubr.msk.f32.vlgmr.msra.gmra.mrb[0].mxu1 %vm718_vm14, %v717_v31  ;;  %972 = vmatprep.subr.msk.mxu1 %vm494_vm10, %v1326_v3 }
 0x33d   : > { %973 = vmatpush1.msk.msra.mxu1 %vm494_vm10, %v1318_v2  ;;  %864 = vmatprep.mubr.f32.mxu1 %v1182_v41 }
 0x344   : > { %974 = vmatmul.mubr.msk.f32.vlgmr.msra.gmra.mrb[0].mxu1 %vm490_vm11, %v324_v13 }
 0x417   : > { %v866_v34 = vpop.f32.mrb[0].mxu1 }
 0x418   : > { %871 = vst [vmem:[%s285_s20] sm:$0xff] %v866_v34  ;;  %v868_v2 = vpop.f32.mrb[1].mxu1 }
 0x419   : > { %872 = vst [vmem:[%s285_s20 + $0x8] sm:$0xff] %v868_v2 }
 0x41a   : > { %1111 = shalt.err (!%p1108_p7)
}
 0x41b   : > { %s1112_s16 = scalar_lea.hbm %s1588_s25, 256  ;;  %s1116_s18 = scalar_lea.hbm %s1635_s7, 512 }
 0x41c   : > { %p1113_p8 = scmp.ne.s32.totalorder %s1588_s25, %s1112_s16  ;;  %p1117_p1 = scmp.lt.u32.totalorder %s1588_s25, %s1635_s7 }
 0x41d   : > { %p1118_p0 = scmp.lt.u32.totalorder %s1116_s18, %s1112_s16  ;;  %p1120_p5 = scmp.lt.u32.totalorder %s1112_s16, %s1588_s25 }
 0x41e   : > { %p1114_p11 = pnand %p1113_p8, %p1654_p9 }
 0x41f   : > { %p1119_p6 = por %p1118_p0, %p1117_p1 }
 0x420   : > { %p1115_p13 = pneg %p1114_p11 }
 0x421   : > { %p1121_p10 = por %p1120_p5, %p1119_p6 }
 0x423   : > { %p1122_p12 = pnand %p1121_p10, %p1115_p13 }
 0x425   : > { %1125 = shalt.err (!%p1122_p12)
}
 0x426   : > { %988 = dma.vmem_to_hbm [thread:$0]  (%p1654_p9), %s1583_s21, 256, %s1588_s25, %s874_s30  }
 0x427 PF: > { %p1000_p2 = scmp.ge.s32.totalorder %s1164_s29, 2  ;;  %s900_s22 = sand.u32 1, %s1152_s26  }
 0x428   : > { %p1655_p3 = scmp.ne.s32.totalorder %s1640_s13, 0  ;;  %s901_s23 = scalar_lea.sflag [#allocation5], %s900_s22 }
 0x42a   : > { %p995_p4 = pnand %p1000_p2, %p1655_p3 }
 0x42c   : > { %1147 = dma.done.wait (!%p995_p4), %s901_s23, 256  }
 0x42d   : > { %1149 = vsyncadd (!%p995_p4), %s901_s23, 4294967040  ;;  %p19_p7 = scmp.ge.s32.totalorder %s1253_s8, 4   ;;  %s1656_s26 = smov %s1156_s27 }
 0x42e   : > { %s1657_s27 = smov %s1160_s28  ;;  %s1658_s28 = smov %s1264_s11 }
 0x42f   : > { %s1659_s29 = smov %s1253_s8  ;;  %21 = sbr.rel (!%p19_p7) target bundleno = 6 (0x6), region = 88 }
 0x436   :  { %906 = vsyncpa [#allocation4], 1 }
 0x437   :  { %908 = vsyncpa [#allocation4 + $0x1], 1 }
 0x438   :  { %909 = vsyncpa [#allocation5], 1 }
 0x439   :  { %911 = vsyncpa [#allocation5 + $0x1], 1 }

</bundles_post_ra>
